<compile_context>
chip_gen: v6e
topology: v6e:2x2x1
jax: 0.10.0
libtpu: 0.0.40
codegen_flags: <defaults>
</compile_context>

<pallas_src>
import numpy as np
import jax
import jax.numpy as jnp
from jax.experimental import pallas as pl

# ----------------------------- configuration ------------------------------
B = 2                   # batch
C_IN = 3                # input image channels (RGB pixel_values)
H = W = 16              # spatial size
IMG_FEAT = 32           # img_feat_dim (stand-in for resnet-18's 512)
NUM_MATERIALS = 5
MATERIAL_DIM = 8
NUM_CLASSES = 2
COMBINED_DIM = IMG_FEAT + MATERIAL_DIM          # 40
KH = KW = 3
K_COLS = KH * KW * C_IN                         # 27
ONES_COL = K_COLS                               # patch column holding 1.0 (conv-bias fold)

# Padded, TPU-friendly sizes.
R = B * H * W                                   # 512 im2col rows (8-aligned)
B_PAD = 8                                       # batch rows -> f32 sublane tile
K_PAD = 32                                      # patch features 27 -> 32
D_PAD = 128                                     # lane-dense feature/logit slab
NUM_MATERIALS_PAD = 8
BIAS_LANE = D_PAD - 1                           # feature lane holding 1.0 (head-bias fold)
POOL_SCALE = 1.0 / (H * W)                      # folded into conv weights/bias

# Pooling matrix: pure 0/1 one-hot (scale folded into conv_w), host constant.
_POOL_NP = np.zeros((B_PAD, R), np.float32)
for _b in range(B):
    _POOL_NP[_b, _b * H * W:(_b + 1) * H * W] = 1.0

_FLOPS = 2 * (R * K_PAD * D_PAD + B_PAD * R * D_PAD
              + B_PAD * NUM_MATERIALS_PAD * D_PAD + 2 * B_PAD * D_PAD * D_PAD)


# ------------------------------ Pallas kernels -----------------------------
def _backbone(patches_ref, conv_w_ref, pool_ref):
    """Conv stem (one bf16 im2col matmul, bias + pool-scale folded in), ReLU,
    then global average pool as an MXU matmul against a 0/1 one-hot matrix."""
    h = jnp.dot(patches_ref[...], conv_w_ref[...],
                preferred_element_type=jnp.float32)          # (R, D_PAD) f32
    h = jnp.maximum(h, 0.0).astype(jnp.bfloat16)
    return jnp.dot(pool_ref[...], h,
                   preferred_element_type=jnp.float32)       # (B_PAD, D_PAD) f32


def _head(feats, w1_ref, w2_ref, out_ref):
    """Linear -> ReLU -> Dropout(identity at inference) -> Linear.
    Biases live in row BIAS_LANE of w1/w2; feats[:, BIAS_LANE] == 1.0."""
    z = jnp.dot(feats.astype(jnp.bfloat16), w1_ref[...],
                preferred_element_type=jnp.float32)
    z = jnp.maximum(z, 0.0)
    out_ref[...] = jnp.dot(z.astype(jnp.bfloat16), w2_ref[...],
                           preferred_element_type=jnp.float32)


def _img_kernel(patches_ref, conv_w_ref, pool_ref, w1_ref, w2_ref, out_ref):
    feats = _backbone(patches_ref, conv_w_ref, pool_ref)
    _head(feats, w1_ref, w2_ref, out_ref)


def _comb_kernel(patches_ref, conv_w_ref, pool_ref, onehot_ref, emb_ref,
                 w1_ref, w2_ref, out_ref):
    feats = _backbone(patches_ref, conv_w_ref, pool_ref)
    # Embedding lookup + concat as one tiny MXU matmul: table pre-placed in
    # lanes [IMG_FEAT, IMG_FEAT+MATERIAL_DIM), where feats is zero by
    # construction (conv_w columns there are zero), so concat == add.
    feats = feats + jnp.dot(onehot_ref[...], emb_ref[...],
                            preferred_element_type=jnp.float32)
    _head(feats, w1_ref, w2_ref, out_ref)


# ------------------------------ pallas_call glue ----------------------------
def _whole(shape):
    nd = len(shape)
    return pl.BlockSpec(shape, lambda i, _nd=nd: (0,) * _nd)


def _fused_call(kernel, args):
    bytes_accessed = int(sum(a.size * a.dtype.itemsize for a in args)
                         + B_PAD * D_PAD * 4)
    return pl.pallas_call(
        kernel,
        out_shape=jax.ShapeDtypeStruct((B_PAD, D_PAD), jnp.float32),
        grid=(1,),
        in_specs=[_whole(a.shape) for a in args],
        out_specs=_whole((B_PAD, D_PAD)),
        cost_estimate=pl.CostEstimate(flops=_FLOPS, transcendentals=0,
                                      bytes_accessed=bytes_accessed),
    )(*args)


# ------------------------------ wrapper (XLA side) ---------------------------
def _build_patches(pixel_values_nchw):
    """NCHW -> NHWC -> pad(1) -> 3x3 unfold -> (R, K_PAD) bf16 slab.
    Column ONES_COL holds 1.0 so conv_b rides the conv matmul for free."""
    x = jnp.transpose(pixel_values_nchw, (0, 2, 3, 1))              # NHWC
    xp = jnp.pad(x, ((0, 0), (1, 1), (1, 1), (0, 0)))
    cols = [xp[:, kh:kh + H, kw:kw + W, :] for kh in range(KH) for kw in range(KW)]
    patches = jnp.stack(cols, axis=3).reshape(R, K_COLS)            # (512, 27)
    ones = jnp.ones((R, 1), patches.dtype)
    pad = jnp.zeros((R, K_PAD - K_COLS - 1), patches.dtype)
    return jnp.concatenate([patches, ones, pad], axis=1).astype(jnp.bfloat16)


def _material_onehot(material):
    """(B_PAD, NUM_MATERIALS_PAD) one-hot selection matrix (rows >= B are zero)."""
    m = material.astype(jnp.int32)
    oh = (m[:, None] == jnp.arange(NUM_MATERIALS_PAD, dtype=jnp.int32)[None, :])
    return jnp.pad(oh.astype(jnp.float32), ((0, B_PAD - B), (0, 0)))


def _pool():
    return jnp.asarray(_POOL_NP, dtype=jnp.bfloat16)


@jax.jit
def forward_img_only(params, pixel_values):
    patches = _build_patches(pixel_values)
    out = _fused_call(_img_kernel,
                      (patches, params["conv_w"], _pool(),
                       params["fc_img_w1"], params["fc_img_w2"]))
    return out[:B, :NUM_CLASSES]


@jax.jit
def forward_with_material(params, pixel_values, material):
    patches = _build_patches(pixel_values)
    out = _fused_call(_comb_kernel,
                      (patches, params["conv_w"], _pool(),
                       _material_onehot(material), params["material_embedding"],
                       params["fc_comb_w1"], params["fc_comb_w2"]))
    return out[:B, :NUM_CLASSES]


def flake_layer_classifier_forward(params, pixel_values, material=None):
    """Mirrors FlakeLayerClassifier.forward (inference / eval mode)."""
    if material is None:
        return forward_img_only(params, pixel_values)
    return forward_with_material(params, pixel_values, material)


# ------------------------------ parameter init ------------------------------
def init_params(key):
    ks = jax.random.split(key, 11)
    s = 0.05

    def place(dst, a, r0=0, c0=0):
        return dst.at[r0:r0 + a.shape[0], c0:c0 + a.shape[1]].set(a)

    conv_w = jax.random.normal(ks[0], (K_COLS, IMG_FEAT), jnp.float32) * s
    conv_b = jax.random.normal(ks[1], (1, IMG_FEAT), jnp.float32) * s
    emb = jax.random.normal(ks[2], (NUM_MATERIALS, MATERIAL_DIM), jnp.float32) * s
    fc_img_w1 = jax.random.normal(ks[3], (IMG_FEAT, IMG_FEAT), jnp.float32) * s
    fc_img_b1 = jax.random.normal(ks[4], (1, IMG_FEAT), jnp.float32) * s
    fc_img_w2 = jax.random.normal(ks[5], (IMG_FEAT, NUM_CLASSES), jnp.float32) * s
    fc_img_b2 = jax.random.normal(ks[6], (1, NUM_CLASSES), jnp.float32) * s
    fc_comb_w1 = jax.random.normal(ks[7], (COMBINED_DIM, COMBINED_DIM), jnp.float32) * s
    fc_comb_b1 = jax.random.normal(ks[8], (1, COMBINED_DIM), jnp.float32) * s
    fc_comb_w2 = jax.random.normal(ks[9], (COMBINED_DIM, NUM_CLASSES), jnp.float32) * s
    fc_comb_b2 = jax.random.normal(ks[10], (1, NUM_CLASSES), jnp.float32) * s

    # Conv stem stand-in for the ResNet backbone: conv bias AND the 1/(H*W)
    # pool scale folded into the (K_PAD, D_PAD) bf16 slab.  Row ONES_COL is the
    # bias row (patches column ONES_COL is 1.0); lane BIAS_LANE feeds the
    # constant-one lane used by the head bias folds.  Columns [IMG_FEAT,
    # BIAS_LANE) stay exactly zero so the concat-as-add invariant holds.
    cw = jnp.zeros((K_PAD, D_PAD), jnp.float32)
    cw = place(cw, conv_w * POOL_SCALE)
    cw = place(cw, conv_b * POOL_SCALE, r0=ONES_COL)
    cw = cw.at[ONES_COL, BIAS_LANE].set(POOL_SCALE)

    def pack_head(w1, b1, w2, b2):
        p1 = jnp.zeros((D_PAD, D_PAD), jnp.float32)
        p1 = place(p1, w1)
        p1 = place(p1, b1, r0=BIAS_LANE)
        p1 = p1.at[BIAS_LANE, BIAS_LANE].set(1.0)   # carry the ones lane into z
        p2 = jnp.zeros((D_PAD, D_PAD), jnp.float32)
        p2 = place(p2, w2)
        p2 = place(p2, b2, r0=BIAS_LANE)
        return p1.astype(jnp.bfloat16), p2.astype(jnp.bfloat16)

    img_w1, img_w2 = pack_head(fc_img_w1, fc_img_b1, fc_img_w2, fc_img_b2)
    comb_w1, comb_w2 = pack_head(fc_comb_w1, fc_comb_b1, fc_comb_w2, fc_comb_b2)

    # nn.Embedding(num_materials, material_dim), pre-placed at columns
    # [IMG_FEAT, IMG_FEAT + MATERIAL_DIM) so in-kernel concat == add.  Tiny
    # (4 KiB), kept f32.
    emb_tbl = jnp.zeros((NUM_MATERIALS_PAD, D_PAD), jnp.float32)
    emb_tbl = place(emb_tbl, emb, c0=IMG_FEAT)

    return {
        "conv_w": cw.astype(jnp.bfloat16),
        "material_embedding": emb_tbl,
        "fc_img_w1": img_w1, "fc_img_w2": img_w2,
        "fc_comb_w1": comb_w1, "fc_comb_w2": comb_w2,
    }


# ------------------------------ pure-JAX reference ---------------------------
def reference_forward(params, pixel_values, material=None):
    """Same padded/bf16 math in plain JAX (f32 accumulation), as sanity check."""
    f32 = lambda a: a.astype(jnp.float32)
    patches = f32(_build_patches(pixel_values))                       # bf16-rounded
    h = jnp.maximum(patches @ f32(params["conv_w"]), 0.0)
    h = f32(h.astype(jnp.bfloat16))
    feats = jnp.asarray(_POOL_NP) @ h                                  # (B_PAD, D_PAD)
    if material is None:
        w1, w2 = params["fc_img_w1"], params["fc_img_w2"]
    else:
        feats = feats + _material_onehot(material) @ params["material_embedding"]
        w1, w2 = params["fc_comb_w1"], params["fc_comb_w2"]
    z = jnp.maximum(f32(feats.astype(jnp.bfloat16)) @ f32(w1), 0.0)
    out = f32(z.astype(jnp.bfloat16)) @ f32(w2)
    return out[:B, :NUM_CLASSES]


if __name__ == "__main__":
    key = jax.random.PRNGKey(0)
    k_px, k_mat, k_par = jax.random.split(key, 3)

    params = init_params(k_par)
    pixel_values = jax.random.normal(k_px, (B, C_IN, H, W), jnp.float32)   # NCHW
    material = jax.random.randint(k_mat, (B,), 0, NUM_MATERIALS, dtype=jnp.int32)

    # Branch with material -> fc_comb head (fused kernel, one-hot embedding matmul).
    logits_comb = flake_layer_classifier_forward(params, pixel_values, material)
    # Branch without material -> fc_img head (fused kernel).
    logits_img = flake_layer_classifier_forward(params, pixel_values, None)

    jax.block_until_ready(logits_comb)
    jax.block_until_ready(logits_img)

    assert logits_comb.shape == (B, NUM_CLASSES)
    assert logits_img.shape == (B, NUM_CLASSES)

    # Sanity check against the plain-JAX reference of the same math.
    ref_comb = reference_forward(params, pixel_values, material)
    ref_img = reference_forward(params, pixel_values, None)
    assert jnp.allclose(logits_comb, ref_comb, rtol=2e-2, atol=5e-3)
    assert jnp.allclose(logits_img, ref_img, rtol=2e-2, atol=5e-3)

    print("KERNEL_OK")
</pallas_src>

<mosaic_0001>
module attributes {stable_mosaic.version = 11 : i64} {
  func.func @_comb_kernel(%arg0: i32, %arg1: memref<512x32xbf16, #tpu.memory_space<vmem>>, %arg2: memref<32x128xbf16, #tpu.memory_space<vmem>>, %arg3: memref<8x512xbf16, #tpu.memory_space<vmem>>, %arg4: memref<8x8xf32, #tpu.memory_space<vmem>>, %arg5: memref<8x128xf32, #tpu.memory_space<vmem>>, %arg6: memref<128x128xbf16, #tpu.memory_space<vmem>>, %arg7: memref<128x128xbf16, #tpu.memory_space<vmem>>, %arg8: memref<8x128xf32, #tpu.memory_space<vmem>>) attributes {dimension_semantics = [#tpu.dimension_semantics<arbitrary>], iteration_bounds = array<i64: 1>, scalar_prefetch = 0 : i64, scratch_operands = 0 : i64, tpu.core_type = #tpu.core_type<tc>, window_params = [{pipeline_mode = #tpu.pipeline_mode<synchronous>, transform_indices = @transform_0, window_bounds = array<i64: 512, 32>}, {pipeline_mode = #tpu.pipeline_mode<synchronous>, transform_indices = @transform_1, window_bounds = array<i64: 32, 128>}, {pipeline_mode = #tpu.pipeline_mode<synchronous>, transform_indices = @transform_2, window_bounds = array<i64: 8, 512>}, {pipeline_mode = #tpu.pipeline_mode<synchronous>, transform_indices = @transform_3, window_bounds = array<i64: 8, 8>}, {pipeline_mode = #tpu.pipeline_mode<synchronous>, transform_indices = @transform_4, window_bounds = array<i64: 8, 128>}, {pipeline_mode = #tpu.pipeline_mode<synchronous>, transform_indices = @transform_5, window_bounds = array<i64: 128, 128>}, {pipeline_mode = #tpu.pipeline_mode<synchronous>, transform_indices = @transform_6, window_bounds = array<i64: 128, 128>}, {pipeline_mode = #tpu.pipeline_mode<synchronous>, transform_indices = @transform_7, window_bounds = array<i64: 8, 128>}]} {
    %c0 = arith.constant 0 : index
    %c0_0 = arith.constant 0 : index
    %0 = vector.load %arg1[%c0, %c0_0] : memref<512x32xbf16, #tpu.memory_space<vmem>>, vector<512x32xbf16>
    %c0_1 = arith.constant 0 : index
    %c0_2 = arith.constant 0 : index
    %1 = vector.load %arg2[%c0_1, %c0_2] : memref<32x128xbf16, #tpu.memory_space<vmem>>, vector<32x128xbf16>
    %cst = arith.constant dense<0.000000e+00> : vector<512x128xf32>
    %2 = tpu.matmul %0, %1, %cst {dimension_numbers = #tpu.dot_dimension_numbers<[1], [0], [0], [1], [0, 0, 1, 1], [], []>} : vector<512x32xbf16>, vector<32x128xbf16>, vector<512x128xf32> -> vector<512x128xf32>
    %cst_3 = arith.constant 0.000000e+00 : f32
    %3 = vector.broadcast %cst_3 : f32 to vector<512x128xf32>
    %4 = arith.maximumf %2, %3 : vector<512x128xf32>
    %5 = arith.truncf %4 : vector<512x128xf32> to vector<512x128xbf16>
    %c0_4 = arith.constant 0 : index
    %c0_5 = arith.constant 0 : index
    %6 = vector.load %arg3[%c0_4, %c0_5] : memref<8x512xbf16, #tpu.memory_space<vmem>>, vector<8x512xbf16>
    %cst_6 = arith.constant dense<0.000000e+00> : vector<8x128xf32>
    %7 = tpu.matmul %6, %5, %cst_6 {dimension_numbers = #tpu.dot_dimension_numbers<[1], [0], [0], [1], [0, 0, 1, 1], [], []>} : vector<8x512xbf16>, vector<512x128xbf16>, vector<8x128xf32> -> vector<8x128xf32>
    %c0_7 = arith.constant 0 : index
    %c0_8 = arith.constant 0 : index
    %8 = vector.load %arg4[%c0_7, %c0_8] : memref<8x8xf32, #tpu.memory_space<vmem>>, vector<8x8xf32>
    %c0_9 = arith.constant 0 : index
    %c0_10 = arith.constant 0 : index
    %9 = vector.load %arg5[%c0_9, %c0_10] : memref<8x128xf32, #tpu.memory_space<vmem>>, vector<8x128xf32>
    %cst_11 = arith.constant dense<0.000000e+00> : vector<8x128xf32>
    %10 = tpu.matmul %8, %9, %cst_11 {dimension_numbers = #tpu.dot_dimension_numbers<[1], [0], [0], [1], [0, 0, 1, 1], [], []>} : vector<8x8xf32>, vector<8x128xf32>, vector<8x128xf32> -> vector<8x128xf32>
    %11 = arith.addf %7, %10 : vector<8x128xf32>
    %12 = arith.truncf %11 : vector<8x128xf32> to vector<8x128xbf16>
    %c0_12 = arith.constant 0 : index
    %c0_13 = arith.constant 0 : index
    %13 = vector.load %arg6[%c0_12, %c0_13] : memref<128x128xbf16, #tpu.memory_space<vmem>>, vector<128x128xbf16>
    %cst_14 = arith.constant dense<0.000000e+00> : vector<8x128xf32>
    %14 = tpu.matmul %12, %13, %cst_14 {dimension_numbers = #tpu.dot_dimension_numbers<[1], [0], [0], [1], [0, 0, 1, 1], [], []>} : vector<8x128xbf16>, vector<128x128xbf16>, vector<8x128xf32> -> vector<8x128xf32>
    %cst_15 = arith.constant 0.000000e+00 : f32
    %15 = vector.broadcast %cst_15 : f32 to vector<8x128xf32>
    %16 = arith.maximumf %14, %15 : vector<8x128xf32>
    %17 = arith.truncf %16 : vector<8x128xf32> to vector<8x128xbf16>
    %c0_16 = arith.constant 0 : index
    %c0_17 = arith.constant 0 : index
    %18 = vector.load %arg7[%c0_16, %c0_17] : memref<128x128xbf16, #tpu.memory_space<vmem>>, vector<128x128xbf16>
    %cst_18 = arith.constant dense<0.000000e+00> : vector<8x128xf32>
    %19 = tpu.matmul %17, %18, %cst_18 {dimension_numbers = #tpu.dot_dimension_numbers<[1], [0], [0], [1], [0, 0, 1, 1], [], []>} : vector<8x128xbf16>, vector<128x128xbf16>, vector<8x128xf32> -> vector<8x128xf32>
    %c0_19 = arith.constant 0 : index
    %c0_20 = arith.constant 0 : index
    %20 = vector.load %arg8[%c0_19, %c0_20] : memref<8x128xf32, #tpu.memory_space<vmem>>, vector<8x128xf32>
    tpu.vector_store %arg8[%c0_19, %c0_20], %19 {strides = array<i32>} : memref<8x128xf32, #tpu.memory_space<vmem>>, vector<8x128xf32>,
    return
  }
  func.func @transform_0(%arg0: i32) -> (i32, i32) {
    %c0_i32 = arith.constant 0 : i32
    %c0_i32_0 = arith.constant 0 : i32
    %c0_i32_1 = arith.constant 0 : i32
    return %c0_i32, %c0_i32_0 : i32, i32
  }
  func.func @transform_1(%arg0: i32) -> (i32, i32) {
    %c0_i32 = arith.constant 0 : i32
    %c0_i32_0 = arith.constant 0 : i32
    %c0_i32_1 = arith.constant 0 : i32
    return %c0_i32, %c0_i32_0 : i32, i32
  }
  func.func @transform_2(%arg0: i32) -> (i32, i32) {
    %c0_i32 = arith.constant 0 : i32
    %c0_i32_0 = arith.constant 0 : i32
    %c0_i32_1 = arith.constant 0 : i32
    return %c0_i32, %c0_i32_0 : i32, i32
  }
  func.func @transform_3(%arg0: i32) -> (i32, i32) {
    %c0_i32 = arith.constant 0 : i32
    %c0_i32_0 = arith.constant 0 : i32
    %c0_i32_1 = arith.constant 0 : i32
    return %c0_i32, %c0_i32_0 : i32, i32
  }
  func.func @transform_4(%arg0: i32) -> (i32, i32) {
    %c0_i32 = arith.constant 0 : i32
    %c0_i32_0 = arith.constant 0 : i32
    %c0_i32_1 = arith.constant 0 : i32
    return %c0_i32, %c0_i32_0 : i32, i32
  }
  func.func @transform_5(%arg0: i32) -> (i32, i32) {
    %c0_i32 = arith.constant 0 : i32
    %c0_i32_0 = arith.constant 0 : i32
    %c0_i32_1 = arith.constant 0 : i32
    return %c0_i32, %c0_i32_0 : i32, i32
  }
  func.func @transform_6(%arg0: i32) -> (i32, i32) {
    %c0_i32 = arith.constant 0 : i32
    %c0_i32_0 = arith.constant 0 : i32
    %c0_i32_1 = arith.constant 0 : i32
    return %c0_i32, %c0_i32_0 : i32, i32
  }
  func.func @transform_7(%arg0: i32) -> (i32, i32) {
    %c0_i32 = arith.constant 0 : i32
    %c0_i32_0 = arith.constant 0 : i32
    %c0_i32_1 = arith.constant 0 : i32
    return %c0_i32, %c0_i32_0 : i32, i32
  }
}

</mosaic_0001>

<bundles_post_ra>
// kernel: forward_with_material.1
= control target key start
LH: loop header
LB: loop body
LE: loop exit
PB: predicated region body
PF: predicated region fallthrough
CT: control target
= control target key end

     0   :  { %vm267_vm0 = vcmask 261120   ;;  %v1491_v34 = vmov 0.0   ;;  %vm1492_vm1 = vmmov 0   ;;  %vm753_vm2 = vcmask 64512   ;;  %s1837_s1 = inlined_call_operand.vmem [shape: bf16[32,128], index: 1, kind: input, shape index: {}]   ;;  %s1838_s0 = inlined_call_operand.vmem [shape: bf16[512,32], index: 0, kind: input, shape index: {}]   ;;  %s1839_s4 = inlined_call_operand.vmem [shape: f32[8,128], index: 4, kind: input, shape index: {}]   ;;  %s1840_s3 = inlined_call_operand.vmem [shape: f32[8,8], index: 3, kind: input, shape index: {}]   ;;  %s1841_s2 = inlined_call_operand.vmem [shape: bf16[8,512], index: 2, kind: input, shape index: {}]   ;;  %s1842_s5 = inlined_call_operand.vmem [shape: bf16[128,128], index: 5, kind: input, shape index: {}]   ;;  %s1843_s6 = inlined_call_operand.vmem [shape: bf16[128,128], index: 6, kind: input, shape index: {}]   ;;  %s1844_s7 = inlined_call_operand.vmem [shape: f32[8,128], index: 7, kind: output, shape index: {}]  }
   0x1   :  { %v1437_v0 = vld [vmem:[%s1837_s1 + $0x8] sm:$0xff]   ;;  %v1438_v1 = vld [vmem:[%s1837_s1] sm:$0xff]   ;;  %v1441_v4 = vld [vmem:[%s1838_s0 + $0x10] sm:$0xff]   ;;  %1390 = vmatprep.subr.mxu1 %v1491_v34  ;;  %1392 = vmatprep.mubr.msk.f32.mxu1 %vm1492_vm1, %v1491_v34 }
   0x2   :  { %1322 = vmatprep.subr.bf16.mxu0 %v1437_v0  ;;  %v1439_v2 = vld [vmem:[%s1838_s0] sm:$0xff]   ;;  %v1440_v3 = vld [vmem:[%s1838_s0 + $0x8] sm:$0xff]   ;;  %v1442_v5 = vld [vmem:[%s1838_s0 + $0x18] sm:$0xff]  }
   0x3   :  { %1323 = vmatpush3.bf16.msra.mxu0 %v1437_v0  ;;  %1326 = vmatprep.mubr.msk.bf16.mxu0 %vm267_vm0, %v1439_v2  ;;  %v1443_v6 = vld [vmem:[%s1838_s0 + $0x20] sm:$0xff]   ;;  %v1444_v7 = vld [vmem:[%s1838_s0 + $0x28] sm:$0xff]   ;;  %v1445_v8 = vld [vmem:[%s1838_s0 + $0x30] sm:$0xff]  }
   0x4   :  { %1324 = vmatprep.subr.bf16.mxu0 %v1438_v1  ;;  %v1446_v9 = vld [vmem:[%s1838_s0 + $0x38] sm:$0xff]   ;;  %v1447_v10 = vld [vmem:[%s1838_s0 + $0x40] sm:$0xff]   ;;  %v1448_v11 = vld [vmem:[%s1838_s0 + $0x48] sm:$0xff]  }
   0x5   :  { %v1449_v12 = vld [vmem:[%s1838_s0 + $0x50] sm:$0xff]   ;;  %v1450_v13 = vld [vmem:[%s1838_s0 + $0x58] sm:$0xff]   ;;  %v1451_v14 = vld [vmem:[%s1838_s0 + $0x60] sm:$0xff]  }
   0x6   :  { %v1452_v15 = vld [vmem:[%s1838_s0 + $0x68] sm:$0xff]   ;;  %v1453_v16 = vld [vmem:[%s1838_s0 + $0x70] sm:$0xff]   ;;  %v1454_v17 = vld [vmem:[%s1838_s0 + $0x78] sm:$0xff]  }
   0x7   :  { %1325 = vmatpush3.bf16.msra.mxu0 %v1438_v1  ;;  %v1455_v18 = vld [vmem:[%s1838_s0 + $0x80] sm:$0xff]   ;;  %v1456_v19 = vld [vmem:[%s1838_s0 + $0x88] sm:$0xff]   ;;  %v1457_v20 = vld [vmem:[%s1838_s0 + $0x90] sm:$0xff]  }
   0x8   :  { %v1458_v21 = vld [vmem:[%s1838_s0 + $0x98] sm:$0xff]   ;;  %v1459_v22 = vld [vmem:[%s1838_s0 + $0xa0] sm:$0xff]   ;;  %v1460_v23 = vld [vmem:[%s1838_s0 + $0xa8] sm:$0xff]  }
   0x9   :  { %v1461_v24 = vld [vmem:[%s1838_s0 + $0xb0] sm:$0xff]   ;;  %v1462_v25 = vld [vmem:[%s1838_s0 + $0xb8] sm:$0xff]   ;;  %v1463_v26 = vld [vmem:[%s1838_s0 + $0xc0] sm:$0xff]  }
   0xa   :  { %1327 = vmatmul.mubr.msk.bf16.vlgmr.msra.gmra.mxu0 %vm267_vm0, %v1440_v3  ;;  %v1464_v27 = vld [vmem:[%s1838_s0 + $0xc8] sm:$0xff]   ;;  %v1465_v28 = vld [vmem:[%s1838_s0 + $0xd0] sm:$0xff]   ;;  %v1466_v29 = vld [vmem:[%s1838_s0 + $0xd8] sm:$0xff]  }
   0xb   :  { %1330 = vmatprep.mubr.msk.bf16.mxu0 %vm267_vm0, %v1441_v4  ;;  %v1467_v30 = vld [vmem:[%s1838_s0 + $0xe0] sm:$0xff]   ;;  %v1468_v31 = vld [vmem:[%s1838_s0 + $0xe8] sm:$0xff]   ;;  %v1469_v32 = vld [vmem:[%s1838_s0 + $0xf0] sm:$0xff]  }
   0xc   :  { %v1470_v33 = vld [vmem:[%s1838_s0 + $0xf8] sm:$0xff]   ;;  %v752_v35 = vld [vmem:[%s1839_s4] sm:$0xff] }
   0xd   :  { %1391 = vmatpush3.msra.mxu1 %v752_v35  ;;  %v751_v36 = vld [vmem:[%s1840_s3] sm:$0xff] }
   0xe   :  { %1393 = vmatmul.mubr.msk.f32.vlgmr.msra.gmra.mxu1 %vm753_vm2, %v751_v36  ;;  %v1679_v37 = vld [vmem:[%s1841_s2] sm:$0xff] }
   0xf   :  { %v1205_v38 = vcombine.high %v1679_v37, %v1679_v37 }
  0x11   :  { %873 = vmatprep.mubr.bf16.mxu1 %v1205_v38 }
  0x12   :  { %1331 = vmatmul.mubr.msk.bf16.gmra.mxu0 %vm267_vm0, %v1442_v5 }
  0x13   :  { %1334 = vmatprep.mubr.msk.bf16.mxu0 %vm267_vm0, %v1443_v6 }
  0x1a   :  { %1335 = vmatmul.mubr.msk.bf16.gmra.mxu0 %vm267_vm0, %v1444_v7 }
  0x1b   :  { %1338 = vmatprep.mubr.msk.bf16.mxu0 %vm267_vm0, %v1445_v8 }
  0x22   :  { %1339 = vmatmul.mubr.msk.bf16.gmra.mxu0 %vm267_vm0, %v1446_v9 }
  0x23   :  { %1342 = vmatprep.mubr.msk.bf16.mxu0 %vm267_vm0, %v1447_v10 }
  0x2a   :  { %1343 = vmatmul.mubr.msk.bf16.gmra.mxu0 %vm267_vm0, %v1448_v11 }
  0x2b   :  { %1346 = vmatprep.mubr.msk.bf16.mxu0 %vm267_vm0, %v1449_v12 }
  0x32   :  { %1347 = vmatmul.mubr.msk.bf16.gmra.mxu0 %vm267_vm0, %v1450_v13 }
  0x33   :  { %1350 = vmatprep.mubr.msk.bf16.mxu0 %vm267_vm0, %v1451_v14 }
  0x3a   :  { %1351 = vmatmul.mubr.msk.bf16.gmra.mxu0 %vm267_vm0, %v1452_v15 }
  0x3b   :  { %1354 = vmatprep.mubr.msk.bf16.mxu0 %vm267_vm0, %v1453_v16 }
  0x42   :  { %1355 = vmatmul.mubr.msk.bf16.gmra.mxu0 %vm267_vm0, %v1454_v17 }
  0x43   :  { %1358 = vmatprep.mubr.msk.bf16.mxu0 %vm267_vm0, %v1455_v18 }
  0x4a   :  { %1359 = vmatmul.mubr.msk.bf16.gmra.mxu0 %vm267_vm0, %v1456_v19 }
  0x4b   :  { %1362 = vmatprep.mubr.msk.bf16.mxu0 %vm267_vm0, %v1457_v20 }
  0x52   :  { %1363 = vmatmul.mubr.msk.bf16.gmra.mxu0 %vm267_vm0, %v1458_v21 }
  0x53   :  { %1366 = vmatprep.mubr.msk.bf16.mxu0 %vm267_vm0, %v1459_v22 }
  0x5a   :  { %1367 = vmatmul.mubr.msk.bf16.gmra.mxu0 %vm267_vm0, %v1460_v23 }
  0x5b   :  { %1370 = vmatprep.mubr.msk.bf16.mxu0 %vm267_vm0, %v1461_v24 }
  0x62   :  { %1371 = vmatmul.mubr.msk.bf16.gmra.mxu0 %vm267_vm0, %v1462_v25 }
  0x63   :  { %1374 = vmatprep.mubr.msk.bf16.mxu0 %vm267_vm0, %v1463_v26 }
  0x6a   :  { %1375 = vmatmul.mubr.msk.bf16.gmra.mxu0 %vm267_vm0, %v1464_v27 }
  0x6b   :  { %1378 = vmatprep.mubr.msk.bf16.mxu0 %vm267_vm0, %v1465_v28 }
  0x72   :  { %1379 = vmatmul.mubr.msk.bf16.gmra.mxu0 %vm267_vm0, %v1466_v29 }
  0x73   :  { %1382 = vmatprep.mubr.msk.bf16.mxu0 %vm267_vm0, %v1467_v30 }
  0x7a   :  { %1383 = vmatmul.mubr.msk.bf16.gmra.mxu0 %vm267_vm0, %v1468_v31 }
  0x7b   :  { %1386 = vmatprep.mubr.msk.bf16.mxu0 %vm267_vm0, %v1469_v32 }
  0x82   :  { %1387 = vmatmul.mubr.msk.bf16.gmra.mxu0 %vm267_vm0, %v1470_v33 }
  0xca   :  { %v1328_v39 = vpop.f32.mrf.mxu0 }
  0xcb   :  { %v655_v42 = vmax.f32 %v1328_v39, 0.0 }
  0xcc   :  { %v398_v40 = vpop.f32.mrf.mxu0 }
  0xcd   :  { %v653_v45 = vmax.f32 %v398_v40, 0.0 }
  0xce   :  { %v1329_v41 = vpop.f32.mrf.mxu0 }
  0xcf   :  { %v656_v43 = vmax.f32 %v1329_v41, 0.0 }
  0xd0   :  { %v401_v44 = vpop.f32.mrf.mxu0 }
  0xd1   :  { %v1683_v46 = vpack.c.bf16 %v656_v43, %v655_v42  ;;  %v654_v47 = vmax.f32 %v401_v44, 0.0 }
  0xd2   :  { %v1332_v48 = vpop.f32.mrf.mxu0 }
  0xd3   :  { %v1685_v49 = vpack.c.bf16 %v654_v47, %v653_v45  ;;  %v659_v52 = vmax.f32 %v1332_v48, 0.0 }
  0xd4   :  { %v414_v50 = vpop.f32.mrf.mxu0 }
  0xd5   :  { %v657_v55 = vmax.f32 %v414_v50, 0.0 }
  0xd6   :  { %v1333_v51 = vpop.f32.mrf.mxu0 }
  0xd7   :  { %v660_v53 = vmax.f32 %v1333_v51, 0.0 }
  0xd8   :  { %v417_v54 = vpop.f32.mrf.mxu0 }
  0xd9   :  { %v1687_v56 = vpack.c.bf16 %v660_v53, %v659_v52  ;;  %v658_v57 = vmax.f32 %v417_v54, 0.0 }
  0xda   :  { %v1336_v58 = vpop.f32.mrf.mxu0 }
  0xdb   :  { %v1689_v59 = vpack.c.bf16 %v658_v57, %v657_v55  ;;  %v663_v43 = vmax.f32 %v1336_v58, 0.0 }
  0xdc   :  { %v1691_v60 = vpop.f32.mrf.mxu0 }
  0xde   :  { %v1337_v61 = vpop.f32.mrf.mxu0 }
  0xdf   :  { %v664_v35 = vmax.f32 %v1337_v61, 0.0  ;;  %v661_v61 = vmax.f32 %v1691_v60, 0.0 }
  0xe0   :  { %v1693_v62 = vpop.f32.mrf.mxu0 }
  0xe1   :  { %v722_v51 = vpack.c.bf16 %v664_v35, %v663_v43  ;;  %v662_v52 = vmax.f32 %v1693_v62, 0.0 }
  0xe2   :  { %v1340_v63 = vpop.f32.mrf.mxu0 }
  0xe3   :  { %v667_v21 = vmax.f32 %v1340_v63, 0.0 }
  0xe4   :  { %v446_v0 = vpop.f32.mrf.mxu0 }
  0xe5   :  { %v665_v31 = vmax.f32 %v446_v0, 0.0  ;;  %v721_v0 = vpack.c.bf16 %v662_v52, %v661_v61  ;;  %v1750_v61 = vpop.f32.mrf.mxu1 }
  0xe6   :  { %v1341_v1 = vpop.f32.mrf.mxu0 }
  0xe7   :  { %v668_v17 = vmax.f32 %v1341_v1, 0.0 }
  0xe8   :  { %v449_v2 = vpop.f32.mrf.mxu0 }
  0xe9   :  { %v724_v26 = vpack.c.bf16 %v668_v17, %v667_v21  ;;  %v666_v27 = vmax.f32 %v449_v2, 0.0 }
  0xea   :  { %v1695_v3 = vpop.f32.mrf.mxu0 }
  0xeb   :  { %v723_v36 = vpack.c.bf16 %v666_v27, %v665_v31 }
  0xec   :  { %v1697_v4 = vpop.f32.mrf.mxu0 }
  0xee   :  { %v1699_v5 = vpop.f32.mrf.mxu0 }
  0xf0   :  { %v1701_v6 = vpop.f32.mrf.mxu0 }
  0xf1   :  { %v670_v21 = vmax.f32 %v1701_v6, 0.0  ;;  %v1204_v6 = vcombine.low %v1679_v37, %v1679_v37 }
  0xf2   :  { %v1348_v7 = vpop.f32.mrf.mxu0 }
  0xf3   :  { %v675_v58 = vmax.f32 %v1348_v7, 0.0  ;;  %v672_v7 = vmax.f32 %v1699_v5, 0.0  ;;  %v669_v5 = vmax.f32 %v1697_v4, 0.0 }
  0xf4   :  { %v1703_v8 = vpop.f32.mrf.mxu0 }
  0xf5   :  { %v673_v62 = vmax.f32 %v1703_v8, 0.0 }
  0xf6   :  { %v1349_v9 = vpop.f32.mrf.mxu0 }
  0xf7   :  { %v676_v54 = vmax.f32 %v1349_v9, 0.0 }
  0xf8   :  { %v1705_v10 = vpop.f32.mrf.mxu0 }
  0xf9   :  { %v728_v2 = vpack.c.bf16 %v676_v54, %v675_v58 }
  0xfa   :  { %v1352_v11 = vpop.f32.mrf.mxu0 }
  0xfb   :  { %v679_v33 = vmax.f32 %v1352_v11, 0.0  ;;  %v674_v11 = vmax.f32 %v1705_v10, 0.0  ;;  %v671_v10 = vmax.f32 %v1695_v3, 0.0 }
  0xfc   :  { %v494_v12 = vpop.f32.mrf.mxu0 }
  0xfd   :  { %v677_v45 = vmax.f32 %v494_v12, 0.0  ;;  %v727_v17 = vpack.c.bf16 %v674_v11, %v673_v62 }
  0xfe   :  { %v1353_v13 = vpop.f32.mrf.mxu0 }
  0xff   :  { %v680_v29 = vmax.f32 %v1353_v13, 0.0 }
 0x100   :  { %v497_v14 = vpop.f32.mrf.mxu0 }
 0x101   :  { %v730_v39 = vpack.c.bf16 %v680_v29, %v679_v33  ;;  %v678_v40 = vmax.f32 %v497_v14, 0.0 }
 0x102   :  { %v1356_v15 = vpop.f32.mrf.mxu0 }
 0x103   :  { %v683_v19 = vmax.f32 %v1356_v15, 0.0  ;;  %v729_v55 = vpack.c.bf16 %v678_v40, %v677_v45 }
 0x104   :  { %v510_v16 = vpop.f32.mrf.mxu0 }
 0x105   :  { %v681_v23 = vmax.f32 %v510_v16, 0.0 }
 0x106   :  { %v1357_v18 = vpop.f32.mrf.mxu0 }
 0x107   :  { %v684_v20 = vmax.f32 %v1357_v18, 0.0 }
 0x108   :  { %v513_v22 = vpop.f32.mrf.mxu0 }
 0x109   :  { %v732_v24 = vpack.c.bf16 %v684_v20, %v683_v19  ;;  %v682_v25 = vmax.f32 %v513_v22, 0.0  ;;  %v726_v20 = vpack.c.bf16 %v672_v7, %v671_v10 }
 0x10a   :  { %v1360_v28 = vpop.f32.mrf.mxu0 }
 0x10b   :  { %v731_v30 = vpack.c.bf16 %v682_v25, %v681_v23  ;;  %1260 = vmatprep.subr.bf16.mxu1 %v732_v24  ;;  %v687_v41 = vmax.f32 %v1360_v28, 0.0  ;;  %v725_v24 = vpack.c.bf16 %v670_v21, %v669_v5 }
 0x10c   :  { %v526_v32 = vpop.f32.mrf.mxu0  ;;  %1261 = vmatpush3.bf16.msra.mxu1 %v724_v26 }
 0x10d   :  { %1262 = vmatprep.subr.bf16.mxu1 %v731_v30  ;;  %v685_v47 = vmax.f32 %v526_v32, 0.0 }
 0x10e   :  { %v1361_v38 = vpop.f32.mrf.mxu0 }
 0x10f   :  { %v688_v42 = vmax.f32 %v1361_v38, 0.0 }
 0x110   :  { %v529_v44 = vpop.f32.mrf.mxu0  ;;  %1263 = vmatpush3.bf16.msra.mxu1 %v723_v36 }
 0x111   :  { %v1707_v48 = vpack.c.bf16 %v688_v42, %v687_v41  ;;  %v686_v50 = vmax.f32 %v529_v44, 0.0  ;;  %1264 = vmatprep.subr.bf16.mxu1 %v730_v39 }
 0x112   :  { %v1364_v53 = vpop.f32.mrf.mxu0 }
 0x113   :  { %v1710_v57 = vpack.c.bf16 %v686_v50, %v685_v47  ;;  %v691_v12 = vmax.f32 %v1364_v53, 0.0 }
 0x114   :  { %v542_v63 = vpop.f32.mrf.mxu0  ;;  %1265 = vmatpush3.bf16.msra.mxu1 %v722_v51 }
 0x115   :  { %1266 = vmatprep.subr.bf16.mxu1 %v729_v55  ;;  %v689_v9 = vmax.f32 %v542_v63, 0.0 }
 0x116   :  { %v1365_v1 = vpop.f32.mrf.mxu0 }
 0x117   :  { %v692_v13 = vmax.f32 %v1365_v1, 0.0  ;;  %v1394_v1 = vpop.f32.mrf.mxu1 }
 0x118   :  { %v545_v14 = vpop.f32.mrf.mxu0  ;;  %1267 = vmatpush3.bf16.msra.mxu1 %v721_v0 }
 0x119   :  { %v1715_v15 = vpack.c.bf16 %v692_v13, %v691_v12  ;;  %v690_v16 = vmax.f32 %v545_v14, 0.0  ;;  %1268 = vmatprep.subr.bf16.mxu1 %v728_v2 }
 0x11a   :  { %v1717_v60 = vpop.f32.mrf.mxu0 }
 0x11b   :  { %v1720_v18 = vpack.c.bf16 %v690_v16, %v689_v9  ;;  %v695_v12 = vmax.f32 %v1717_v60, 0.0 }
 0x11c   :  { %v1722_v19 = vpop.f32.mrf.mxu0  ;;  %1269 = vmatpush3.bf16.msra.mxu1 %v1687_v56  ;;  %v1737_v56 = vld [vmem:[%s1841_s2 + $0x8] sm:$0xff] }
 0x11d   :  { %1270 = vmatprep.subr.bf16.mxu1 %v727_v17  ;;  %v693_v7 = vmax.f32 %v1722_v19, 0.0 }
 0x11e   :  { %v1726_v8 = vpop.f32.mrf.mxu0 }
 0x11f   :  { %v696_v58 = vmax.f32 %v1726_v8, 0.0 }
 0x120   :  { %v1729_v22 = vpop.f32.mrf.mxu0  ;;  %1271 = vmatpush3.bf16.msra.mxu1 %v1689_v59  ;;  %v1207_v59 = vcombine.high %v1737_v56, %v1737_v56 }
 0x121   :  { %1272 = vmatprep.subr.bf16.mxu1 %v726_v20  ;;  %v738_v14 = vpack.c.bf16 %v696_v58, %v695_v12  ;;  %v694_v62 = vmax.f32 %v1729_v22, 0.0 }
 0x122   :  { %v1372_v23 = vpop.f32.mrf.mxu0 }
 0x123   :  { %v699_v43 = vmax.f32 %v1372_v23, 0.0  ;;  %v737_v10 = vpack.c.bf16 %v694_v62, %v693_v7 }
 0x124   :  { %v574_v25 = vpop.f32.mrf.mxu0  ;;  %1273 = vmatpush3.bf16.msra.mxu1 %v1683_v46 }
 0x125   :  { %1274 = vmatprep.subr.bf16.mxu1 %v725_v24  ;;  %v697_v55 = vmax.f32 %v574_v25, 0.0 }
 0x126   :  { %v1373_v3 = vpop.f32.mrf.mxu0 }
 0x127   :  { %v700_v39 = vmax.f32 %v1373_v3, 0.0  ;;  %v1206_v3 = vcombine.low %v1737_v56, %v1737_v56  ;;  %v1479_v56 = vld [vmem:[%s1842_s5 + $0x18] sm:$0xff]  }
 0x128   :  { %v577_v26 = vpop.f32.mrf.mxu0  ;;  %1275 = vmatpush3.bf16.msra.mxu1 %v1685_v49 }
 0x129   :  { %v740_v51 = vpack.c.bf16 %v700_v39, %v699_v43  ;;  %v698_v52 = vmax.f32 %v577_v26, 0.0  ;;  %v1481_v26 = vld [vmem:[%s1842_s5 + $0x8] sm:$0xff]   ;;  %v1484_v39 = vld [vmem:[%s1843_s6 + $0x30] sm:$0xff]  }
 0x12a   :  { %v1744_v4 = vpop.f32.mrf.mxu0  ;;  %v1488_v43 = vld [vmem:[%s1843_s6 + $0x10] sm:$0xff]  }
 0x12b   :  { %874 = vmatmul.mubr.bf16.vlgmr.msra.gmra.mxu1 %v1204_v6  ;;  %v739_v0 = vpack.c.bf16 %v698_v52, %v697_v55  ;;  %v703_v23 = vmax.f32 %v1744_v4, 0.0  ;;  %v1480_v6 = vld [vmem:[%s1842_s5 + $0x10] sm:$0xff]  }
 0x12c   :  { %v1746_v46 = vpop.f32.mrf.mxu0  ;;  %913 = vmatprep.mubr.bf16.mxu1 %v1207_v59  ;;  %v1482_v59 = vld [vmem:[%s1842_s5] sm:$0xff]  }
 0x12d   :  { %v701_v19 = vmax.f32 %v1746_v46, 0.0 }
 0x12e   :  { %v1377_v27 = vpop.f32.mrf.mxu0 }
 0x12f   :  { %v704_v60 = vmax.f32 %v1377_v27, 0.0 }
 0x130   :  { %v1748_v28 = vpop.f32.mrf.mxu0 }
 0x131   :  { %v742_v22 = vpack.c.bf16 %v704_v60, %v703_v23  ;;  %v702_v24 = vmax.f32 %v1748_v28, 0.0 }
 0x132   :  { %v1380_v29 = vpop.f32.mrf.mxu0 }
 0x133   :  { %v707_v17 = vmax.f32 %v1380_v29, 0.0  ;;  %v741_v25 = vpack.c.bf16 %v702_v24, %v701_v19 }
 0x134   :  { %v606_v30 = vpop.f32.mrf.mxu0 }
 0x135   :  { %v705_v21 = vmax.f32 %v606_v30, 0.0 }
 0x136   :  { %v1381_v31 = vpop.f32.mrf.mxu0 }
 0x137   :  { %v708_v9 = vmax.f32 %v1381_v31, 0.0 }
 0x138   :  { %v609_v32 = vpop.f32.mrf.mxu0 }
 0x139   :  { %v744_v8 = vpack.c.bf16 %v708_v9, %v707_v17  ;;  %v706_v20 = vmax.f32 %v609_v32, 0.0 }
 0x13a   :  { %v1384_v37 = vpop.f32.mrf.mxu0 }
 0x13b   :  { %v711_v63 = vmax.f32 %v1384_v37, 0.0  ;;  %v743_v5 = vpack.c.bf16 %v706_v20, %v705_v21 }
 0x13c   :  { %v622_v33 = vpop.f32.mrf.mxu0 }
 0x13d   :  { %v709_v13 = vmax.f32 %v622_v33, 0.0 }
 0x13e   :  { %v1385_v35 = vpop.f32.mrf.mxu0 }
 0x13f   :  { %v712_v53 = vmax.f32 %v1385_v35, 0.0 }
 0x140   :  { %v625_v49 = vpop.f32.mrf.mxu0 }
 0x141   :  { %v746_v2 = vpack.c.bf16 %v712_v53, %v711_v63  ;;  %v710_v11 = vmax.f32 %v625_v49, 0.0 }
 0x142   :  { %v1388_v36 = vpop.f32.mrf.mxu0 }
 0x143   :  { %v715_v41 = vmax.f32 %v1388_v36, 0.0  ;;  %v745_v16 = vpack.c.bf16 %v710_v11, %v709_v13  ;;  %v1483_v36 = vld [vmem:[%s1843_s6 + $0x38] sm:$0xff]  }
 0x144   :  { %v638_v38 = vpop.f32.mrf.mxu0 }
 0x145   :  { %v713_v45 = vmax.f32 %v638_v38, 0.0 }
 0x146   :  { %v1389_v40 = vpop.f32.mrf.mxu0 }
 0x147   :  { %v716_v42 = vmax.f32 %v1389_v40, 0.0  ;;  %v1485_v40 = vld [vmem:[%s1843_s6 + $0x28] sm:$0xff]  }
 0x148   :  { %v641_v44 = vpop.f32.mrf.mxu0 }
 0x149   :  { %v748_v47 = vpack.c.bf16 %v716_v42, %v715_v41  ;;  %v714_v50 = vmax.f32 %v641_v44, 0.0  ;;  %v1486_v41 = vld [vmem:[%s1843_s6 + $0x20] sm:$0xff]   ;;  %v1487_v42 = vld [vmem:[%s1843_s6 + $0x18] sm:$0xff]   ;;  %v1489_v44 = vld [vmem:[%s1843_s6 + $0x8] sm:$0xff]  }
 0x14b   :  { %v747_v54 = vpack.c.bf16 %v714_v50, %v713_v45  ;;  %1282 = vmatprep.subr.bf16.mxu1 %v748_v47  ;;  %v1490_v45 = vld [vmem:[%s1843_s6] sm:$0xff]  }
 0x14c   :  { %1283 = vmatpush3.bf16.msra.mxu1 %v740_v51 }
 0x14d   :  { %1284 = vmatprep.subr.bf16.mxu1 %v747_v54 }
 0x150   :  { %1285 = vmatpush3.bf16.msra.mxu1 %v739_v0 }
 0x151   :  { %1286 = vmatprep.subr.bf16.mxu1 %v746_v2 }
 0x154   :  { %1287 = vmatpush3.bf16.msra.mxu1 %v738_v14 }
 0x155   :  { %1288 = vmatprep.subr.bf16.mxu1 %v745_v16 }
 0x158   :  { %1289 = vmatpush3.bf16.msra.mxu1 %v737_v10 }
 0x159   :  { %1290 = vmatprep.subr.bf16.mxu1 %v744_v8 }
 0x15c   :  { %1291 = vmatpush3.bf16.msra.mxu1 %v1715_v15  ;;  %v1475_v15 = vld [vmem:[%s1842_s5 + $0x38] sm:$0xff]  }
 0x15d   :  { %1292 = vmatprep.subr.bf16.mxu1 %v743_v5 }
 0x160   :  { %1293 = vmatpush3.bf16.msra.mxu1 %v1720_v18  ;;  %v1478_v18 = vld [vmem:[%s1842_s5 + $0x20] sm:$0xff]  }
 0x161   :  { %1294 = vmatprep.subr.bf16.mxu1 %v742_v22 }
 0x164   :  { %1295 = vmatpush3.bf16.msra.mxu1 %v1707_v48  ;;  %v1476_v48 = vld [vmem:[%s1842_s5 + $0x30] sm:$0xff]  }
 0x165   :  { %1296 = vmatprep.subr.bf16.mxu1 %v741_v25 }
 0x168   :  { %1297 = vmatpush3.bf16.msra.mxu1 %v1710_v57  ;;  %v1477_v57 = vld [vmem:[%s1842_s5 + $0x28] sm:$0xff]  }
 0x169   :  { %1395 = vmatprep.subr.bf16.mxu1 %v1491_v34 }
 0x16b   :  { %914 = vmatmul.mubr.bf16.vlgmr.msra.gmra.mxu1 %v1206_v3 }
 0x16c   :  { %1411 = vmatprep.mubr.msk.bf16.mxu1 %vm1492_vm1, %v1491_v34  ;;  %1396 = vmatpush3.bf16.msra.mxu1 %v1475_v15 }
 0x16d   :  { %1397 = vmatprep.subr.bf16.mxu1 %v1491_v34 }
 0x170   :  { %1398 = vmatpush3.bf16.msra.mxu1 %v1476_v48 }
 0x171   :  { %1399 = vmatprep.subr.bf16.mxu1 %v1491_v34 }
 0x174   :  { %1400 = vmatpush3.bf16.msra.mxu1 %v1477_v57 }
 0x175   :  { %1401 = vmatprep.subr.bf16.mxu1 %v1491_v34 }
 0x178   :  { %1402 = vmatpush3.bf16.msra.mxu1 %v1478_v18 }
 0x179   :  { %1403 = vmatprep.subr.bf16.mxu1 %v1491_v34 }
 0x17c   :  { %1404 = vmatpush3.bf16.msra.mxu1 %v1479_v56 }
 0x17d   :  { %1405 = vmatprep.subr.bf16.mxu1 %v1491_v34 }
 0x180   :  { %1406 = vmatpush3.bf16.msra.mxu1 %v1480_v6 }
 0x181   :  { %1407 = vmatprep.subr.bf16.mxu1 %v1491_v34 }
 0x184   :  { %1408 = vmatpush3.bf16.msra.mxu1 %v1481_v26 }
 0x185   :  { %1409 = vmatprep.subr.bf16.mxu1 %v1491_v34 }
 0x188   :  { %1410 = vmatpush3.bf16.msra.mxu1 %v1482_v59 }
 0x189   :  { %1415 = vmatprep.subr.bf16.mxu1 %v1491_v34 }
 0x1eb   :  { %v1276_v4 = vpop.f32.mrf.mxu1 }
 0x1ed   :  { %v1277_v46 = vpop.f32.mrf.mxu1 }
 0x1ee   :  { %v1278_v29 = vadd.f32 %v1277_v46, %v1276_v4 }
 0x1ef   :  { %v1279_v27 = vpop.f32.mrf.mxu1 }
 0x1f0   :  { %v876_v32 = vadd.f32 %v1278_v29, %v1750_v61 }
 0x1f1   :  { %v1280_v28 = vpop.f32.mrf.mxu1 }
 0x22b   :  { %v1298_v30 = vpop.f32.mrf.mxu1 }
 0x22d   :  { %v1299_v31 = vpop.f32.mrf.mxu1 }
 0x22e   :  { %v1300_v37 = vadd.f32 %v1299_v31, %v1298_v30 }
 0x22f   :  { %v1301_v33 = vpop.f32.mrf.mxu1 }
 0x230   :  { %v916_v35 = vadd.f32 %v1300_v37, %v876_v32 }
 0x231   :  { %v1302_v49 = vpop.f32.mrf.mxu1 }
 0x232   :  { %v921_v38 = vpack.c.bf16 %v916_v35, %v916_v35 }
 0x234   :  { %1412 = vmatmul.mubr.bf16.vlgmr.msra.gmra.mxu1 %v921_v38 }
 0x235   :  { %1416 = vmatpush3.bf16.msra.mxu1 %v1483_v36  ;;  %1431 = vmatprep.mubr.msk.bf16.mxu1 %vm1492_vm1, %v1491_v34 }
 0x236   :  { %1417 = vmatprep.subr.bf16.mxu1 %v1491_v34 }
 0x239   :  { %1418 = vmatpush3.bf16.msra.mxu1 %v1484_v39 }
 0x23a   :  { %1419 = vmatprep.subr.bf16.mxu1 %v1491_v34 }
 0x23d   :  { %1420 = vmatpush3.bf16.msra.mxu1 %v1485_v40 }
 0x23e   :  { %1421 = vmatprep.subr.bf16.mxu1 %v1491_v34 }
 0x241   :  { %1422 = vmatpush3.bf16.msra.mxu1 %v1486_v41 }
 0x242   :  { %1423 = vmatprep.subr.bf16.mxu1 %v1491_v34 }
 0x245   :  { %1424 = vmatpush3.bf16.msra.mxu1 %v1487_v42 }
 0x246   :  { %1425 = vmatprep.subr.bf16.mxu1 %v1491_v34 }
 0x249   :  { %1426 = vmatpush3.bf16.msra.mxu1 %v1488_v43 }
 0x24a   :  { %1427 = vmatprep.subr.bf16.mxu1 %v1491_v34 }
 0x24d   :  { %1428 = vmatpush3.bf16.msra.mxu1 %v1489_v44 }
 0x24e   :  { %1429 = vmatprep.subr.bf16.mxu1 %v1491_v34 }
 0x251   :  { %1430 = vmatpush3.bf16.msra.mxu1 %v1490_v45 }
 0x2f4   :  { %v1020_v47 = vpop.f32.mrf.mxu1 }
 0x2f5   :  { %v1026_v50 = vmax.f32 %v1020_v47, 0.0 }
 0x2f6   :  { %v1413_v51 = vpop.f32.mrf.mxu1 }
 0x2f7   :  { %v1027_v52 = vpack.c.bf16 %v1026_v50, %v1026_v50 }
 0x2f8   :  { %v1023_v53 = vpop.f32.mrf.mxu1 }
 0x2f9   :  { %1432 = vmatmul.mubr.bf16.vlgmr.msra.gmra.mxu1 %v1027_v52 }
 0x2fa   :  { %v1414_v54 = vpop.f32.mrf.mxu1 }
 0x3b9   :  { %v1126_v55 = vpop.f32.mrf.mxu1 }
 0x3ba   :  { %1132 = vst [vmem:[%s1844_s7] sm:$0xff] %v1126_v55 }
 0x3bb   :  { %v1433_v61 = vpop.f32.mrf.mxu1 }
 0x3bd   :  { %v1129_v63 = vpop.f32.mrf.mxu1 }
 0x3bf   :  { %v1434_v34 = vpop.f32.mrf.mxu1 }

</bundles_post_ra>
